<compile_context>
chip_gen: v7x
topology: tpu7x:2x2x1
jax: 0.10.0
libtpu: 0.0.40
codegen_flags: <defaults>
</compile_context>

<pallas_src>
import functools

import jax
import jax.numpy as jnp
from jax.experimental import pallas as pl
from jax.experimental.pallas import tpu as pltpu


def _round_up(n, m):
    return ((n + m - 1) // m) * m


def _pad_to(a, shape):
    return jnp.pad(a, [(0, s - d) for d, s in zip(a.shape, shape)])


def _qnet_kernel(x_ref, w1_ref, w2_ref, w3_ref, b12_ref, b3_ref, o_ref, *, compute_dtype):
    # Cast x on the VPU inside the kernel (hides under the tile DMA; f32 -> no-op).
    x = x_ref[...].astype(compute_dtype)
    # fc1 + relu (MXU matmul, f32 accumulate; bias/ReLU in f32 on the VPU -> v5e-safe)
    h = jnp.dot(x, w1_ref[...], preferred_element_type=jnp.float32)
    h = jnp.maximum(h + b12_ref[0:1, :], 0.0)
    # fc2 + relu
    h = jnp.dot(h.astype(compute_dtype), w2_ref[...], preferred_element_type=jnp.float32)
    h = jnp.maximum(h + b12_ref[1:2, :], 0.0)
    # fc3 (no activation); output keeps the real out_size -> tiny HBM writeback
    h = jnp.dot(h.astype(compute_dtype), w3_ref[...], preferred_element_type=jnp.float32)
    o_ref[...] = (h + b3_ref[...]).astype(o_ref.dtype)


def qnetwork_forward(x, params, *, tile_b=1024, compute_dtype=jnp.bfloat16):
    """x: (B, input_size) f32. params: w1,b1,w2,b2,w3,b3 with y = x @ W + b layout."""
    w1, b1 = params["w1"], params["b1"]
    w2, b2 = params["w2"], params["b2"]
    w3, b3 = params["w3"], params["b3"]

    B, in_size = x.shape
    hidden = w1.shape[1]
    out_size = w3.shape[1]

    hp = _round_up(hidden, 128)  # lane-dense hidden dim (VMEM-only; zero-pad is free math)

    # Pad + cast parameters once. Weights go to compute_dtype for the MXU; biases stay f32
    # so the epilogue runs in f32 (no bf16 VPU needed on v5e). w3 is NOT padded in N.
    w1p = _pad_to(w1, (in_size, hp)).astype(compute_dtype)
    w2p = _pad_to(w2, (hp, hp)).astype(compute_dtype)
    w3p = _pad_to(w3, (hp, out_size)).astype(compute_dtype)
    b12 = jnp.concatenate(
        [_pad_to(b1.astype(jnp.float32), (1, hp)),
         _pad_to(b2.astype(jnp.float32), (1, hp))], axis=0)  # (2, hp): one DMA
    b3f = b3.astype(jnp.float32)                              # (1, out_size)

    # Batch tiling: tb rows per grid step.  Cap the tile at ceil(B/2) so there are >=2
    # grid steps whenever the batch allows (v7x second TensorCore gets work).
    tile_b = max(8, _round_up(tile_b, 8))
    half = _round_up(max(8, (B + 1) // 2), 8)
    tb = min(tile_b, half)
    bp = _round_up(B, tb)
    # Pad the batch (f32, no dtype round-trip) only when it doesn't divide evenly.
    # Padded rows compute bias-propagated garbage that is sliced off below.
    x_p = x if bp == B else _pad_to(x, (bp, in_size))

    kernel = functools.partial(_qnet_kernel, compute_dtype=compute_dtype)

    out_p = pl.pallas_call(
        kernel,
        out_shape=jax.ShapeDtypeStruct((bp, out_size), jnp.float32),
        grid=(bp // tb,),
        in_specs=[
            pl.BlockSpec((tb, in_size), lambda i: (i, 0)),     # x: streamed, double-buffered
            pl.BlockSpec((in_size, hp), lambda i: (0, 0)),     # weights/biases: constant
            pl.BlockSpec((hp, hp), lambda i: (0, 0)),          #   block index -> fetched
            pl.BlockSpec((hp, out_size), lambda i: (0, 0)),    #   once, VMEM-resident
            pl.BlockSpec((2, hp), lambda i: (0, 0)),           # packed fc1/fc2 biases
            pl.BlockSpec((1, out_size), lambda i: (0, 0)),     # fc3 bias (unpadded)
        ],
        out_specs=pl.BlockSpec((tb, out_size), lambda i: (i, 0)),
        compiler_params=pltpu.CompilerParams(
            dimension_semantics=("parallel",),                 # batch axis -> 2 TCs on v7x
        ),
    )(x_p, w1p, w2p, w3p, b12, b3f)

    return out_p if bp == B else out_p[:B]


def init_params(key, input_size, output_size, hidden=64):
    """Deterministic init mimicking nn.Linear default (uniform +-1/sqrt(fan_in))."""
    def linear(k, fan_in, fan_out):
        kw, kb = jax.random.split(k)
        bound = 1.0 / jnp.sqrt(fan_in)
        w = jax.random.uniform(kw, (fan_in, fan_out), jnp.float32, -bound, bound)
        b = jax.random.uniform(kb, (1, fan_out), jnp.float32, -bound, bound)
        return w, b

    k1, k2, k3 = jax.random.split(key, 3)
    w1, b1 = linear(k1, input_size, hidden)
    w2, b2 = linear(k2, hidden, hidden)
    w3, b3 = linear(k3, hidden, output_size)
    return {"w1": w1, "b1": b1, "w2": w2, "b2": b2, "w3": w3, "b3": b3}


def qnetwork_ref(x, p):
    h = jnp.maximum(x @ p["w1"] + p["b1"], 0.0)
    h = jnp.maximum(h @ p["w2"] + p["b2"], 0.0)
    return h @ p["w3"] + p["b3"]


if __name__ == "__main__":
    key = jax.random.PRNGKey(0)
    kp, kx, kb = jax.random.split(key, 3)

    batch, input_size, output_size = 8, 16, 4
    params = init_params(kp, input_size, output_size)
    x = jax.random.normal(kx, (batch, input_size), jnp.float32)
    ref = qnetwork_ref(x, params)

    # 1) exact-numerics path (f32 MXU inputs): tight check of the kernel structure.
    out_f32 = jax.block_until_ready(
        qnetwork_forward(x, params, compute_dtype=jnp.float32))
    assert out_f32.shape == (batch, output_size)
    assert jnp.allclose(out_f32, ref, atol=1e-4, rtol=1e-4)

    # 2) non-divisible batch exercising multi-step grid + batch padding (still f32).
    x_big = jax.random.normal(kb, (100, input_size), jnp.float32)
    out_big = jax.block_until_ready(
        qnetwork_forward(x_big, params, tile_b=1024, compute_dtype=jnp.float32))
    assert out_big.shape == (100, output_size)
    assert jnp.allclose(out_big, qnetwork_ref(x_big, params), atol=1e-4, rtol=1e-4)

    # 3) default bf16-MXU path (perf config): loose sanity check against the f32 reference.
    out_bf16 = jax.block_until_ready(qnetwork_forward(x, params))
    assert out_bf16.shape == (batch, output_size)
    assert jnp.allclose(out_bf16, ref, atol=1e-1, rtol=1e-1)

    print("KERNEL_OK")
</pallas_src>

<mosaic_0001>
module attributes {stable_mosaic.version = 11 : i64} {
  func.func @_qnet_kernel(%arg0: i32, %arg1: memref<8x16xf32, #tpu.memory_space<vmem>>, %arg2: memref<16x128xf32, #tpu.memory_space<vmem>>, %arg3: memref<128x128xf32, #tpu.memory_space<vmem>>, %arg4: memref<128x4xf32, #tpu.memory_space<vmem>>, %arg5: memref<2x128xf32, #tpu.memory_space<vmem>>, %arg6: memref<1x4xf32, #tpu.memory_space<vmem>>, %arg7: memref<8x4xf32, #tpu.memory_space<vmem>>) attributes {dimension_semantics = [#tpu.dimension_semantics<parallel>], iteration_bounds = array<i64: 1>, scalar_prefetch = 0 : i64, scratch_operands = 0 : i64, tpu.core_type = #tpu.core_type<tc>, window_params = [{transform_indices = @transform_0, window_bounds = array<i64: 8, 16>}, {pipeline_mode = #tpu.pipeline_mode<synchronous>, transform_indices = @transform_1, window_bounds = array<i64: 16, 128>}, {pipeline_mode = #tpu.pipeline_mode<synchronous>, transform_indices = @transform_2, window_bounds = array<i64: 128, 128>}, {pipeline_mode = #tpu.pipeline_mode<synchronous>, transform_indices = @transform_3, window_bounds = array<i64: 128, 4>}, {pipeline_mode = #tpu.pipeline_mode<synchronous>, transform_indices = @transform_4, window_bounds = array<i64: 2, 128>}, {pipeline_mode = #tpu.pipeline_mode<synchronous>, transform_indices = @transform_5, window_bounds = array<i64: 1, 4>}, {transform_indices = @transform_6, window_bounds = array<i64: 8, 4>}]} {
    %c0 = arith.constant 0 : index
    %c0_0 = arith.constant 0 : index
    %0 = vector.load %arg1[%c0, %c0_0] : memref<8x16xf32, #tpu.memory_space<vmem>>, vector<8x16xf32>
    %c0_1 = arith.constant 0 : index
    %c0_2 = arith.constant 0 : index
    %1 = vector.load %arg2[%c0_1, %c0_2] : memref<16x128xf32, #tpu.memory_space<vmem>>, vector<16x128xf32>
    %cst = arith.constant dense<0.000000e+00> : vector<8x128xf32>
    %2 = tpu.matmul %0, %1, %cst {dimension_numbers = #tpu.dot_dimension_numbers<[1], [0], [0], [1], [0, 0, 1, 1], [], []>} : vector<8x16xf32>, vector<16x128xf32>, vector<8x128xf32> -> vector<8x128xf32>
    %c0_3 = arith.constant 0 : index
    %c0_4 = arith.constant 0 : index
    %3 = vector.load %arg5[%c0_3, %c0_4] : memref<2x128xf32, #tpu.memory_space<vmem>>, vector<1x128xf32>
    %4 = vector.broadcast %3 : vector<1x128xf32> to vector<8x128xf32>
    %5 = arith.addf %2, %4 : vector<8x128xf32>
    %cst_5 = arith.constant 0.000000e+00 : f32
    %6 = vector.broadcast %cst_5 : f32 to vector<8x128xf32>
    %7 = arith.maximumf %5, %6 : vector<8x128xf32>
    %c0_6 = arith.constant 0 : index
    %c0_7 = arith.constant 0 : index
    %8 = vector.load %arg3[%c0_6, %c0_7] : memref<128x128xf32, #tpu.memory_space<vmem>>, vector<128x128xf32>
    %cst_8 = arith.constant dense<0.000000e+00> : vector<8x128xf32>
    %9 = tpu.matmul %7, %8, %cst_8 {dimension_numbers = #tpu.dot_dimension_numbers<[1], [0], [0], [1], [0, 0, 1, 1], [], []>} : vector<8x128xf32>, vector<128x128xf32>, vector<8x128xf32> -> vector<8x128xf32>
    %c1 = arith.constant 1 : index
    %c0_9 = arith.constant 0 : index
    %10 = vector.load %arg5[%c1, %c0_9] : memref<2x128xf32, #tpu.memory_space<vmem>>, vector<1x128xf32>
    %11 = vector.broadcast %10 : vector<1x128xf32> to vector<8x128xf32>
    %12 = arith.addf %9, %11 : vector<8x128xf32>
    %cst_10 = arith.constant 0.000000e+00 : f32
    %13 = vector.broadcast %cst_10 : f32 to vector<8x128xf32>
    %14 = arith.maximumf %12, %13 : vector<8x128xf32>
    %c0_11 = arith.constant 0 : index
    %c0_12 = arith.constant 0 : index
    %15 = vector.load %arg4[%c0_11, %c0_12] : memref<128x4xf32, #tpu.memory_space<vmem>>, vector<128x4xf32>
    %cst_13 = arith.constant dense<0.000000e+00> : vector<8x4xf32>
    %16 = tpu.matmul %14, %15, %cst_13 {dimension_numbers = #tpu.dot_dimension_numbers<[1], [0], [0], [1], [0, 0, 1, 1], [], []>} : vector<8x128xf32>, vector<128x4xf32>, vector<8x4xf32> -> vector<8x4xf32>
    %c0_14 = arith.constant 0 : index
    %c0_15 = arith.constant 0 : index
    %17 = vector.load %arg6[%c0_14, %c0_15] : memref<1x4xf32, #tpu.memory_space<vmem>>, vector<1x4xf32>
    %18 = vector.broadcast %17 : vector<1x4xf32> to vector<8x4xf32>
    %19 = arith.addf %16, %18 : vector<8x4xf32>
    %c0_16 = arith.constant 0 : index
    %c0_17 = arith.constant 0 : index
    %20 = vector.load %arg7[%c0_16, %c0_17] : memref<8x4xf32, #tpu.memory_space<vmem>>, vector<8x4xf32>
    tpu.vector_store %arg7[%c0_16, %c0_17], %19 {strides = array<i32>} : memref<8x4xf32, #tpu.memory_space<vmem>>, vector<8x4xf32>,
    return
  }
  func.func @transform_0(%arg0: i32) -> (i32, i32) {
    %c0_i32 = arith.constant 0 : i32
    %c0_i32_0 = arith.constant 0 : i32
    return %arg0, %c0_i32 : i32, i32
  }
  func.func @transform_1(%arg0: i32) -> (i32, i32) {
    %c0_i32 = arith.constant 0 : i32
    %c0_i32_0 = arith.constant 0 : i32
    %c0_i32_1 = arith.constant 0 : i32
    return %c0_i32, %c0_i32_0 : i32, i32
  }
  func.func @transform_2(%arg0: i32) -> (i32, i32) {
    %c0_i32 = arith.constant 0 : i32
    %c0_i32_0 = arith.constant 0 : i32
    %c0_i32_1 = arith.constant 0 : i32
    return %c0_i32, %c0_i32_0 : i32, i32
  }
  func.func @transform_3(%arg0: i32) -> (i32, i32) {
    %c0_i32 = arith.constant 0 : i32
    %c0_i32_0 = arith.constant 0 : i32
    %c0_i32_1 = arith.constant 0 : i32
    return %c0_i32, %c0_i32_0 : i32, i32
  }
  func.func @transform_4(%arg0: i32) -> (i32, i32) {
    %c0_i32 = arith.constant 0 : i32
    %c0_i32_0 = arith.constant 0 : i32
    %c0_i32_1 = arith.constant 0 : i32
    return %c0_i32, %c0_i32_0 : i32, i32
  }
  func.func @transform_5(%arg0: i32) -> (i32, i32) {
    %c0_i32 = arith.constant 0 : i32
    %c0_i32_0 = arith.constant 0 : i32
    %c0_i32_1 = arith.constant 0 : i32
    return %c0_i32, %c0_i32_0 : i32, i32
  }
  func.func @transform_6(%arg0: i32) -> (i32, i32) {
    %c0_i32 = arith.constant 0 : i32
    %c0_i32_0 = arith.constant 0 : i32
    return %arg0, %c0_i32 : i32, i32
  }
}

</mosaic_0001>

<bundles_post_ra>
// kernel: tpu_custom_call.1
= control target key start
LH: loop header
LB: loop body
LE: loop exit
PB: predicated region body
PF: predicated region fallthrough
CT: control target
= control target key end

     0   :  { %11 = vsyncpa [#allocation3], 0  ;;  %s511_s21 = smov [#allocation2]   ;;  %s695_s0 = inlined_call_operand.vmem [shape: f32[8,16], index: 0, kind: input, shape index: {}]   ;;  %s696_s1 = inlined_call_operand.hbm [shape: f32[16,128], index: 1, kind: input, shape index: {}]   ;;  %s697_s2 = inlined_call_operand.vmem [shape: f32[128,128], index: 2, kind: input, shape index: {}]   ;;  %s698_s3 = inlined_call_operand.vmem [shape: f32[128,4], index: 3, kind: input, shape index: {}]   ;;  %s699_s4 = inlined_call_operand.vmem [shape: f32[2,128], index: 4, kind: input, shape index: {}]   ;;  %s700_s5 = inlined_call_operand.vmem [shape: f32[1,4], index: 5, kind: input, shape index: {}]   ;;  %s701_s6 = inlined_call_operand.vmem [shape: f32[8,4], index: 6, kind: output, shape index: {}]  }
   0x1   :  { %s19_s22 = sshll.u32 %s511_s21, 4  ;;  %s487_s25 = scalar_lea.hbm %s696_s1, 256  ;;  %s20_s22 = int_to_ptr.vmem [resolvable:$true] %s19_s22 }
   0x2   :  { %p488_p0 = scmp.ne.s32.totalorder %s696_s1, %s487_s25  ;;  %p491_p1 = scmp.lt.u32.totalorder %s487_s25, %s696_s1 }
   0x4   :  { %p493_p2 = pnand %p491_p1, %p488_p0 }
   0x6   :  { %496 = shalt.err (!%p493_p2)
}
   0x7   :  { %s497_s30 = scalar_lea.vmem %s20_s22, 256  ;;  %p502_p4 = scmp.lt.s32.totalorder %s20_s22, %s20_s22 }
   0x8   :  { %p498_p3 = scmp.ne.s32.totalorder %s20_s22, %s497_s30  ;;  %p503_p5 = scmp.lt.s32.totalorder %s497_s30, %s497_s30 }
   0xa   :  { %p504_p6 = por %p503_p5, %p502_p4 }
   0xc   :  { %p505_p7 = pnand %p504_p6, %p498_p3 }
   0xe   :  { %508 = shalt.err (!%p505_p7)
}
   0xf   :  { %s512_s7 = smov 128   ;;  %s513_s8 = smov 8  }
  0x10   :  { %25 = dma.hbm_to_vmem [thread:$0]  %s696_s1, 256, %s20_s22, [#allocation3], %s512_s7, %s512_s7, %s513_s8  }
  0x11   :  { %509 = dma.done.wait [#allocation3], 256  }
  0x12   :  { %510 = vsyncadd [#allocation3], 4294967040  ;;  %v514_v0 = vmov 0.0|0.0   ;;  %vm515_vm0 = vmmov 0   ;;  %v516_v1 = vmov 0.0   ;;  %v38_v2 = vld [vmem:[#allocation2] sm:$0xff] }
  0x13   :  { %430 = vmatprep.subr.bf16.mxu0 %v514_v0  ;;  %357 = vmatprep.mubr.msk.f32.mxu0 %vm515_vm0, %v516_v1  ;;  %v39_v3 = vld [vmem:[#allocation2 + $0x8] sm:$0xff]  ;;  %v120_v5 = vld [vmem:[%s697_s2] sm:$0xff]  ;;  %v122_v7 = vld [vmem:[%s697_s2 + $0x10] sm:$0xff]  ;;  %vm45_vm1 = vcmask 130048   ;;  %vm305_vm2 = vcmask 31744  }
  0x14   :  { %433 = vmatprep.subr.bf16.mxu1 %v514_v0  ;;  %392 = vmatprep.mubr.msk.f32.mxu1 %vm515_vm0, %v516_v1  ;;  %v431_v4 = vpack.c.bf16 %v39_v3, %v38_v2  ;;  %v121_v6 = vld [vmem:[%s697_s2 + $0x8] sm:$0xff]  ;;  %v123_v9 = vld [vmem:[%s697_s2 + $0x18] sm:$0xff]  ;;  %v37_v10 = vld [vmem:[%s695_s0] sm:$0xff] }
  0x15   :  { %v434_v8 = vpack.c.bf16 %v121_v6, %v120_v5  ;;  %v437_v11 = vpack.c.bf16 %v123_v9, %v122_v7  ;;  %v124_v12 = vld [vmem:[%s697_s2 + $0x20] sm:$0xff]  ;;  %v125_v13 = vld [vmem:[%s697_s2 + $0x28] sm:$0xff]  ;;  %v126_v15 = vld [vmem:[%s697_s2 + $0x30] sm:$0xff] }
  0x16   :  { %432 = vmatpush3.bf16.msra.mxu0 %v431_v4  ;;  %v440_v14 = vpack.c.bf16 %v125_v13, %v124_v12  ;;  %v127_v16 = vld [vmem:[%s697_s2 + $0x38] sm:$0xff]  ;;  %v128_v18 = vld [vmem:[%s697_s2 + $0x40] sm:$0xff]  ;;  %v129_v19 = vld [vmem:[%s697_s2 + $0x48] sm:$0xff] }
  0x17   :  { %435 = vmatpush3.bf16.msra.mxu1 %v434_v8  ;;  %457 = vmatprep.subr.bf16.mxu0 %v514_v0  ;;  %v443_v17 = vpack.c.bf16 %v127_v16, %v126_v15  ;;  %v446_v20 = vpack.c.bf16 %v129_v19, %v128_v18  ;;  %v130_v21 = vld [vmem:[%s697_s2 + $0x50] sm:$0xff]  ;;  %v131_v22 = vld [vmem:[%s697_s2 + $0x58] sm:$0xff]  ;;  %v132_v24 = vld [vmem:[%s697_s2 + $0x60] sm:$0xff] }
  0x18   :  { %436 = vmatprep.subr.bf16.mxu1 %v514_v0  ;;  %v449_v23 = vpack.c.bf16 %v131_v22, %v130_v21  ;;  %v133_v25 = vld [vmem:[%s697_s2 + $0x68] sm:$0xff]  ;;  %v134_v27 = vld [vmem:[%s697_s2 + $0x70] sm:$0xff]  ;;  %v135_v28 = vld [vmem:[%s697_s2 + $0x78] sm:$0xff] }
  0x19   :  { %358 = vmatmul.mubr.msk.f32.vlgmr.msra.gmra.mrb[0].mxu0 %vm45_vm1, %v37_v10  ;;  %v452_v26 = vpack.c.bf16 %v133_v25, %v132_v24  ;;  %v455_v29 = vpack.c.bf16 %v135_v28, %v134_v27  ;;  %v212_v30 = vld [vmem:[%s698_s3] sm:$0xff]  ;;  %v213_v31 = vld [vmem:[%s698_s3 + $0x8] sm:$0xff]  ;;  %v214_v32 = vld [vmem:[%s698_s3 + $0x10] sm:$0xff] }
  0x1a   :  { %427 = vmatprep.mubr.msk.f32.mxu0 %vm515_vm0, %v516_v1  ;;  %v458_v33 = vpack.c.bf16 %v213_v31, %v212_v30  ;;  %v215_v34 = vld [vmem:[%s698_s3 + $0x18] sm:$0xff]  ;;  %v216_v36 = vld [vmem:[%s698_s3 + $0x20] sm:$0xff]  ;;  %v217_v37 = vld [vmem:[%s698_s3 + $0x28] sm:$0xff] }
  0x1b   :  { %438 = vmatpush3.bf16.msra.mxu1 %v437_v11  ;;  %v461_v35 = vpack.c.bf16 %v215_v34, %v214_v32  ;;  %v464_v38 = vpack.c.bf16 %v217_v37, %v216_v36  ;;  %v218_v39 = vld [vmem:[%s698_s3 + $0x30] sm:$0xff]  ;;  %v219_v40 = vld [vmem:[%s698_s3 + $0x38] sm:$0xff]  ;;  %v220_v42 = vld [vmem:[%s698_s3 + $0x40] sm:$0xff] }
  0x1c   :  { %439 = vmatprep.subr.bf16.mxu1 %v514_v0  ;;  %459 = vmatpush3.bf16.msra.mxu0 %v458_v33  ;;  %v467_v41 = vpack.c.bf16 %v219_v40, %v218_v39  ;;  %v221_v43 = vld [vmem:[%s698_s3 + $0x48] sm:$0xff]  ;;  %v222_v45 = vld [vmem:[%s698_s3 + $0x50] sm:$0xff]  ;;  %v223_v46 = vld [vmem:[%s698_s3 + $0x58] sm:$0xff] }
  0x1d   :  { %460 = vmatprep.subr.bf16.mxu0 %v514_v0  ;;  %v470_v44 = vpack.c.bf16 %v221_v43, %v220_v42  ;;  %v473_v47 = vpack.c.bf16 %v223_v46, %v222_v45  ;;  %v224_v48 = vld [vmem:[%s698_s3 + $0x60] sm:$0xff]  ;;  %v225_v49 = vld [vmem:[%s698_s3 + $0x68] sm:$0xff]  ;;  %v226_v56 = vld [vmem:[%s698_s3 + $0x70] sm:$0xff] }
  0x1e   :  { %v476_v50 = vpack.c.bf16 %v225_v49, %v224_v48  ;;  %v312_v51 = vld [vmem:[%s699_s4] ss:$0 sm:$0xff]  ;;  %v227_v57 = vld [vmem:[%s698_s3 + $0x78] sm:$0xff]  ;;  %v314_v59 = vld [vmem:[%s699_s4 + $0x1] ss:$0 sm:$0xff] }
  0x1f   :  { %441 = vmatpush3.bf16.msra.mxu1 %v440_v14  ;;  %v479_v58 = vpack.c.bf16 %v227_v57, %v226_v56 }
  0x20   :  { %442 = vmatprep.subr.bf16.mxu1 %v514_v0  ;;  %462 = vmatpush3.bf16.msra.mxu0 %v461_v35 }
  0x21   :  { %463 = vmatprep.subr.bf16.mxu0 %v514_v0 }
  0x23   :  { %444 = vmatpush3.bf16.msra.mxu1 %v443_v17 }
  0x24   :  { %445 = vmatprep.subr.bf16.mxu1 %v514_v0  ;;  %465 = vmatpush3.bf16.msra.mxu0 %v464_v38 }
  0x25   :  { %466 = vmatprep.subr.bf16.mxu0 %v514_v0 }
  0x27   :  { %447 = vmatpush3.bf16.msra.mxu1 %v446_v20 }
  0x28   :  { %448 = vmatprep.subr.bf16.mxu1 %v514_v0  ;;  %468 = vmatpush3.bf16.msra.mxu0 %v467_v41 }
  0x29   :  { %469 = vmatprep.subr.bf16.mxu0 %v514_v0 }
  0x2b   :  { %450 = vmatpush3.bf16.msra.mxu1 %v449_v23 }
  0x2c   :  { %451 = vmatprep.subr.bf16.mxu1 %v514_v0  ;;  %471 = vmatpush3.bf16.msra.mxu0 %v470_v44 }
  0x2d   :  { %472 = vmatprep.subr.bf16.mxu0 %v514_v0 }
  0x2f   :  { %453 = vmatpush3.bf16.msra.mxu1 %v452_v26 }
  0x30   :  { %454 = vmatprep.subr.bf16.mxu1 %v514_v0  ;;  %474 = vmatpush3.bf16.msra.mxu0 %v473_v47 }
  0x31   :  { %475 = vmatprep.subr.bf16.mxu0 %v514_v0 }
  0x33   :  { %456 = vmatpush3.bf16.msra.mxu1 %v455_v29 }
  0x34   :  { %477 = vmatpush3.bf16.msra.mxu0 %v476_v50 }
  0x35   :  { %478 = vmatprep.subr.bf16.mxu0 %v514_v0  ;;  %v315_v0 = vld [vmem:[%s700_s5] ss:$0 sm:$0xff] }
  0x38   :  { %480 = vmatpush3.bf16.msra.mxu0 %v479_v58 }
  0xec   :  { %v115_v52 = vpop.f32.mrb[0].mxu0 }
  0xed   :  { %v116_v53 = vadd.f32 %v312_v51, %v115_v52  ;;  %v359_v54 = vpop.f32.mrb[1].mxu0 }
  0xef   :  { %v119_v55 = vmax.f32 %v116_v53, 0.0 }
  0xf1   :  { %393 = vmatmul.mubr.f32.vlgmr.msra.gmra.mrb[0].mxu1 %v119_v55 }
 0x1c4   :  { %v207_v60 = vpop.f32.mrb[0].mxu1 }
 0x1c5   :  { %v208_v61 = vadd.f32 %v314_v59, %v207_v60  ;;  %v394_v62 = vpop.f32.mrb[1].mxu1 }
 0x1c7   :  { %v211_v63 = vmax.f32 %v208_v61, 0.0 }
 0x1c9   :  { %428 = vmatmul.mubr.f32.vlgmr.msra.gmra.mrb[2].mxu0 %v211_v63 }
 0x29c   :  { %v301_v1 = vpop.f32.mrb[2].mxu0 }
 0x29d   :  { %v302_v2 = vadd.f32 %v315_v0, %v301_v1  ;;  %v429_v3 = vpop.f32.mrb[3].mxu0 }
 0x29f   :  { %306 = vst.msk [vmem:[%s701_s6] sm:$0xff] %vm305_vm2, %v302_v2 }
 0x2a0   :  { %311 = vsyncpa [#allocation3], 1 }

</bundles_post_ra>
